<compile_context>
chip_gen: v6e
topology: v6e:2x2x1
jax: 0.10.0
libtpu: 0.0.40
codegen_flags: <defaults>
</compile_context>

<pallas_src>
import jax
import jax.numpy as jnp
from jax.experimental import pallas as pl
from jax.experimental.pallas import tpu as pltpu


def _normalizer_kernel(scale_ref, offset_ref, x_ref, o_ref):
    # x block: (tr, 128); scale/offset blocks: (tr, 1) -> lane-broadcast FMA.
    o_ref[...] = x_ref[...].astype(jnp.float32) * scale_ref[...] + offset_ref[...]


def _pick_row_tile(total_rows, sublane, max_tr, min_tr=512, min_steps=4):
    """Choose (tile_rows, padded_rows) for the fused (rows, 128) layout.

    tile_rows is a multiple of `sublane` (or equals the full row count, which
    is always layout-legal); padded_rows >= total_rows is a whole number of
    tiles so no block ever runs ragged (no masked stores)."""
    max_tr = max(sublane, (max_tr // sublane) * sublane)
    limit = min(total_rows, max_tr)
    divisors = [t for t in range(sublane, limit + 1, sublane)
                if total_rows % t == 0]
    if divisors:
        # Prefer the largest divisor that still leaves >= min_steps uniform
        # grid steps (v7x megacore balance / pipelining) and a block of at
        # least min_tr rows; otherwise just take the largest aligned divisor.
        preferred = [t for t in divisors
                     if t >= min_tr and total_rows // t >= min_steps]
        tr = max(preferred) if preferred else max(divisors)
        return tr, total_rows
    if total_rows <= max_tr:
        # Full row axis as a single block (block dim == full dim is legal).
        return total_rows, total_rows
    # No aligned divisor: pad the row count up to a whole number of tiles.
    tr = max_tr
    padded = -(-total_rows // tr) * tr
    return tr, padded


def normalizer(x, mean, std):
    """x: (N, C, H, W); mean/std: (C,) float32. Returns float32 (N, C, H, W)."""
    N, C, H, W = x.shape
    L = H * W
    itemsize = jnp.dtype(x.dtype).itemsize
    sublane = {1: 32, 2: 16, 4: 8}.get(itemsize, 8)

    # Fold `(x/255 - m)/s` (batch 0) and `x/255` (other batches) into a
    # per-(n, c) scale/offset pair computed once on the host.
    std_f = std.astype(jnp.float32)
    mean_f = mean.astype(jnp.float32)
    scale_nc = jnp.full((N, C), 1.0 / 255.0, dtype=jnp.float32)
    offset_nc = jnp.zeros((N, C), dtype=jnp.float32)
    scale_nc = scale_nc.at[0].set(1.0 / (255.0 * std_f))
    offset_nc = offset_nc.at[0].set(-mean_f / std_f)

    # Lane-dense flatten: each (n, c) plane becomes rows of 128 lanes,
    # zero-padding the plane length up to a multiple of 128 if needed so that
    # every row belongs to exactly one (n, c) pair and every store is full-lane.
    rows_per_plane = -(-L // 128)
    L_pad = rows_per_plane * 128
    x_flat = x.reshape(N * C, L)
    if L_pad != L:
        x_flat = jnp.pad(x_flat, ((0, 0), (0, L_pad - L)))
    total_rows = N * C * rows_per_plane
    x2d = x_flat.reshape(total_rows, 128)

    # Per-row scale/offset column vectors (plane value repeated per row).
    scale_rows = jnp.repeat(scale_nc.reshape(-1), rows_per_plane)[:, None]
    offset_rows = jnp.repeat(offset_nc.reshape(-1), rows_per_plane)[:, None]

    # Row tile: <= ~4 MiB of f32 output per block, sublane-aligned.
    max_out_block_bytes = 4 * 1024 * 1024
    max_tr = max(sublane, max_out_block_bytes // (128 * 4))
    tr, padded_rows = _pick_row_tile(total_rows, sublane, max_tr)
    if padded_rows != total_rows:
        pad = padded_rows - total_rows
        x2d = jnp.pad(x2d, ((0, pad), (0, 0)))
        scale_rows = jnp.pad(scale_rows, ((0, pad), (0, 0)))
        offset_rows = jnp.pad(offset_rows, ((0, pad), (0, 0)))

    grid = (padded_rows // tr,)

    # Explicit VMEM budget: double-buffered in/out/vector blocks + headroom.
    out_blk = tr * 128 * 4
    in_blk = tr * 128 * itemsize
    vec_blk = 2 * tr * 4
    vmem_limit = int(min(max(2 * (out_blk + in_blk + vec_blk) + (4 << 20),
                             8 << 20), 48 << 20))

    in_bytes = x2d.size * itemsize + 2 * padded_rows * 4
    out_bytes = padded_rows * 128 * 4

    out = pl.pallas_call(
        _normalizer_kernel,
        out_shape=jax.ShapeDtypeStruct((padded_rows, 128), jnp.float32),
        grid_spec=pltpu.PrefetchScalarGridSpec(
            num_scalar_prefetch=0,
            grid=grid,
            in_specs=[
                pl.BlockSpec((tr, 1), lambda i: (i, 0)),    # scale rows
                pl.BlockSpec((tr, 1), lambda i: (i, 0)),    # offset rows
                pl.BlockSpec((tr, 128), lambda i: (i, 0)),  # input rows
            ],
            out_specs=pl.BlockSpec((tr, 128), lambda i: (i, 0)),
        ),
        compiler_params=pltpu.CompilerParams(
            dimension_semantics=("parallel",),
            vmem_limit_bytes=vmem_limit,
        ),
        cost_estimate=pl.CostEstimate(
            flops=2 * padded_rows * 128,
            transcendentals=0,
            bytes_accessed=in_bytes + out_bytes,
        ),
    )(scale_rows, offset_rows, x2d)

    # Strip padding and restore the original layout.
    out = out[:total_rows].reshape(N * C, L_pad)[:, :L]
    return out.reshape(N, C, H, W)


def _reference(x, mean, std):
    t = x / 255.0
    t0 = (t[0] - mean[:, None, None]) / std[:, None, None]
    return t.at[0].set(t0)


if __name__ == "__main__":
    key = jax.random.PRNGKey(0)

    # Deterministic parameters from the module's __init__
    mean = jnp.array([0.485, 0.456, 0.406], dtype=jnp.float32)
    std = jnp.array([0.229, 0.224, 0.225], dtype=jnp.float32)

    # Case 1: plane size is a multiple of 128 (pure lane-dense path).
    N, C, H, W = 2, 3, 16, 16
    x = jax.random.uniform(key, (N, C, H, W), dtype=jnp.float32) * 255.0
    out = jax.block_until_ready(normalizer(x, mean, std))
    ref = _reference(x, mean, std)
    assert out.shape == (N, C, H, W)
    assert out.dtype == jnp.float32
    assert jnp.allclose(out, ref, atol=1e-5, rtol=1e-5), "mismatch vs reference"

    # Case 2: plane size NOT a multiple of 128 (padded lane-dense path).
    H2, W2 = 9, 9
    x2 = jax.random.uniform(jax.random.PRNGKey(1), (N, C, H2, W2),
                            dtype=jnp.float32) * 255.0
    out2 = jax.block_until_ready(normalizer(x2, mean, std))
    ref2 = _reference(x2, mean, std)
    assert out2.shape == (N, C, H2, W2)
    assert jnp.allclose(out2, ref2, atol=1e-5, rtol=1e-5), "mismatch (padded path)"

    print("KERNEL_OK")
</pallas_src>

<mosaic_0001>
module attributes {stable_mosaic.version = 11 : i64} {
  func.func @_normalizer_kernel(%arg0: i32, %arg1: memref<12x1xf32, #tpu.memory_space<vmem>>, %arg2: memref<12x1xf32, #tpu.memory_space<vmem>>, %arg3: memref<12x128xf32, #tpu.memory_space<vmem>>, %arg4: memref<12x128xf32, #tpu.memory_space<vmem>>) attributes {dimension_semantics = [#tpu.dimension_semantics<parallel>], iteration_bounds = array<i64: 1>, scalar_prefetch = 0 : i64, scratch_operands = 0 : i64, tpu.core_type = #tpu.core_type<tc>, window_params = [{transform_indices = @transform_0, window_bounds = array<i64: 12, 1>}, {transform_indices = @transform_1, window_bounds = array<i64: 12, 1>}, {transform_indices = @transform_2, window_bounds = array<i64: 12, 128>}, {transform_indices = @transform_3, window_bounds = array<i64: 12, 128>}]} {
    %c0 = arith.constant 0 : index
    %c0_0 = arith.constant 0 : index
    %0 = vector.load %arg3[%c0, %c0_0] : memref<12x128xf32, #tpu.memory_space<vmem>>, vector<12x128xf32>
    %c0_1 = arith.constant 0 : index
    %c0_2 = arith.constant 0 : index
    %1 = vector.load %arg1[%c0_1, %c0_2] : memref<12x1xf32, #tpu.memory_space<vmem>>, vector<12x1xf32>
    %2 = vector.broadcast %1 : vector<12x1xf32> to vector<12x128xf32>
    %3 = arith.mulf %0, %2 : vector<12x128xf32>
    %c0_3 = arith.constant 0 : index
    %c0_4 = arith.constant 0 : index
    %4 = vector.load %arg2[%c0_3, %c0_4] : memref<12x1xf32, #tpu.memory_space<vmem>>, vector<12x1xf32>
    %5 = vector.broadcast %4 : vector<12x1xf32> to vector<12x128xf32>
    %6 = arith.addf %3, %5 : vector<12x128xf32>
    %c0_5 = arith.constant 0 : index
    %c0_6 = arith.constant 0 : index
    %7 = vector.load %arg4[%c0_5, %c0_6] : memref<12x128xf32, #tpu.memory_space<vmem>>, vector<12x128xf32>
    tpu.vector_store %arg4[%c0_5, %c0_6], %6 {strides = array<i32>} : memref<12x128xf32, #tpu.memory_space<vmem>>, vector<12x128xf32>,
    return
  }
  func.func @transform_0(%arg0: i32) -> (i32, i32) {
    %c0_i32 = arith.constant 0 : i32
    %c0_i32_0 = arith.constant 0 : i32
    return %arg0, %c0_i32 : i32, i32
  }
  func.func @transform_1(%arg0: i32) -> (i32, i32) {
    %c0_i32 = arith.constant 0 : i32
    %c0_i32_0 = arith.constant 0 : i32
    return %arg0, %c0_i32 : i32, i32
  }
  func.func @transform_2(%arg0: i32) -> (i32, i32) {
    %c0_i32 = arith.constant 0 : i32
    %c0_i32_0 = arith.constant 0 : i32
    return %arg0, %c0_i32 : i32, i32
  }
  func.func @transform_3(%arg0: i32) -> (i32, i32) {
    %c0_i32 = arith.constant 0 : i32
    %c0_i32_0 = arith.constant 0 : i32
    return %arg0, %c0_i32 : i32, i32
  }
}

</mosaic_0001>

<bundles_post_ra>
// kernel: tpu_custom_call.1
= control target key start
LH: loop header
LB: loop body
LE: loop exit
PB: predicated region body
PF: predicated region fallthrough
CT: control target
= control target key end

     0   :  { %v91_v2 = vmov 0   ;;  %s136_s0 = inlined_call_operand.vmem [shape: f32[12,1], index: 0, kind: input, shape index: {}]   ;;  %s137_s1 = inlined_call_operand.vmem [shape: f32[12,1], index: 1, kind: input, shape index: {}]   ;;  %s138_s2 = inlined_call_operand.vmem [shape: f32[12,128], index: 2, kind: input, shape index: {}]   ;;  %s139_s3 = inlined_call_operand.hbm [shape: f32[12,128], index: 3, kind: output, shape index: {}]  }
   0x1   :  { %v31_v0 = vld [vmem:[%s137_s1] sm:$0xff]  ;;  %68 = vset.pattern.permute.xlu1 %v91_v2  ;;  %67 = vset.pattern.permute.xlu0 %v91_v2 }
   0x2   :  { %v17_v1 = vld [vmem:[%s136_s0] sm:$0xff]  ;;  %35 = vperm.xlu1 %68, %v31_v0  }
   0x3   :  { %21 = vperm.xlu0 %67, %v17_v1  }
   0x4   :  { %8 = vsyncpa [#allocation3], 0  ;;  %v32_v3 = vld [vmem:[%s137_s1 + $0x8] sm:$0xf]  ;;  %v15_v5 = vld [vmem:[%s138_s2] sm:$0xff]  ;;  %s92_s24 = smov [#allocation2]  }
   0x5   :  { %v18_v4 = vld [vmem:[%s136_s0 + $0x8] sm:$0xf]  ;;  %s52_s1 = sshll.u32 %s92_s24, 4  ;;  %s53_s1 = int_to_ptr.vmem [resolvable:$true] %s52_s1 }
   0x6   :  { %40 = vperm.xlu1 %68, %v32_v3   ;;  %v16_v9 = vld [vmem:[%s138_s2 + $0x8] sm:$0xf]  ;;  %s69_s0 = scalar_lea.vmem %s53_s1, 256  ;;  %p74_p1 = scmp.lt.s32.totalorder %s53_s1, %s53_s1 }
   0x7   :  { %26 = vperm.xlu0 %67, %v18_v4   ;;  %p70_p0 = scmp.ne.s32.totalorder %s53_s1, %s69_s0  ;;  %p75_p2 = scmp.lt.s32.totalorder %s69_s0, %s69_s0 }
   0x9   :  { %p76_p3 = por %p75_p2, %p74_p1 }
   0xb   :  { %p77_p4 = pnand %p76_p3, %p70_p0 }
  0x7d   :  { %v36_v6 = vpop.permute.xlu1 %35 }
  0x7e   :  { %v22_v7 = vpop.permute.xlu0 %21 }
  0x7f   :  { %v29_v8 = vmul.f32 %v22_v7, %v15_v5 }
  0x81   :  { %v43_v10 = vadd.f32 %v36_v6, %v29_v8  ;;  %v41_v13 = vpop.permute.xlu1 %40 }
  0x82   :  { %v27_v11 = vpop.permute.xlu0 %26 }
  0x83   :  { %45 = vst [vmem:[#allocation2] sm:$0xff] %v43_v10  ;;  %v30_v12 = vmul.f32 %v27_v11, %v16_v9 }
  0x85   :  { %v44_v14 = vadd.f32 %v41_v13, %v30_v12 }
  0x87   :  { %46 = vst [vmem:[#allocation2 + $0x8] sm:$0xf] %v44_v14 }
  0x88   :  { %80 = shalt.err (!%p77_p4)
}
  0x89   :  { %s93_s25 = smov 128   ;;  %s94_s26 = smov 8  }
  0x8a   :  { %58 = dma.vmem_to_hbm [thread:$0]  %s53_s1, 256, %s139_s3, [#allocation3], %s93_s25, %s93_s25, %s94_s26  }
  0x8b   :  { %89 = dma.done.wait [#allocation3], 256  }
  0x8c   :  { %90 = vsyncadd [#allocation3], 4294967040 }
  0x8d   :  { %62 = vsyncpa [#allocation3], 1 }

</bundles_post_ra>
